<compile_context>
chip_gen: v5e
topology: v5e:2x2
jax: 0.10.0
libtpu: 0.0.40
codegen_flags: <defaults>
</compile_context>

<pallas_src>
import functools

import jax
import jax.numpy as jnp
import numpy as np
from jax import lax
from jax.experimental import pallas as pl
from jax.experimental.pallas import tpu as pltpu

BN_EPS = 1e-5


# ----------------------------------------------------------------------------
# Pass 1: partial conv (matmul on transposed patches) + renormalize + hole fill
#         + per-tile partial sums for the BatchNorm reduction.
# ----------------------------------------------------------------------------
def _pconv_kernel(xp_ref, msum_ref, w_ref, out_ref, nmask_ref, sum_ref, ssq_ref):
    xp = xp_ref[...]        # [K, TM]   (x * mask) im2col patches, transposed
    w = w_ref[...]          # [C_out, K]
    msum = msum_ref[...]    # [1, TM]   sum of the mask over each conv window

    # PartialConv: conv(input * mask); conv_bias=False so no bias term.
    conv = jnp.dot(w, xp, preferred_element_type=jnp.float32)   # [C_out, TM]

    holes = msum == 0.0
    denom = jnp.where(holes, 1.0, msum)
    out = conv * pl.reciprocal(denom, approx=True)              # renormalize (EUP)
    out = jnp.where(holes, 0.0, out)                            # fill holes

    out_ref[...] = out                                          # lane-dense store
    nmask_ref[...] = (~holes).astype(jnp.float32)               # [1, TM]

    # Per-tile partial sums for two-pass BatchNorm (reduced in the wrapper).
    sum_ref[...] = jnp.sum(out, axis=1, keepdims=True)[None]    # [1, C_out, 1]
    ssq_ref[...] = jnp.sum(out * out, axis=1, keepdims=True)[None]


# ----------------------------------------------------------------------------
# Pass 2: apply folded BatchNorm (y = out*scale + shift) + ReLU.
# ----------------------------------------------------------------------------
def _bn_act_kernel(x_ref, scale_ref, shift_ref, o_ref):
    o_ref[...] = jnp.maximum(x_ref[...] * scale_ref[...] + shift_ref[...], 0.0)


# ----------------------------------------------------------------------------
# Host-side glue
# ----------------------------------------------------------------------------
def _round_up(x, n):
    return ((x + n - 1) // n) * n


def _im2col_t(x, kh, kw, stride, pad):
    """x: [N, C, H, W] -> transposed patches [C*kh*kw, N*Ho*Wo], plus (Ho, Wo)."""
    n, c, h, w = x.shape
    xp = jnp.pad(x, ((0, 0), (0, 0), (pad, pad), (pad, pad)))
    ho = (h + 2 * pad - kh) // stride + 1
    wo = (w + 2 * pad - kw) // stride + 1
    cols = []
    for i in range(kh):
        for j in range(kw):
            cols.append(xp[:, :, i:i + stride * ho:stride, j:j + stride * wo:stride])
    p = jnp.stack(cols, axis=2)            # [N, C, kh*kw, Ho, Wo]
    p = p.transpose(1, 2, 0, 3, 4)         # [C, kh*kw, N, Ho, Wo]
    return p.reshape(c * kh * kw, n * ho * wo), ho, wo


@functools.partial(jax.jit,
                   static_argnames=("kernel_size", "stride", "padding", "tile_m"))
def pcbactiv_forward(x, mask, weight, gamma, beta,
                     kernel_size=3, stride=1, padding=1, tile_m=4096):
    """x, mask: [N, C_in, H, W] (NCHW); weight: [C_out, C_in, KH, KW]."""
    x = x.astype(jnp.float32)
    mask = mask.astype(jnp.float32)
    n, c_in, h, w = x.shape
    c_out = weight.shape[0]
    kh = kw = kernel_size

    # Mask the input on the 4-D tensor (9x cheaper than masking the patches),
    # then im2col directly into the transposed [K, M] layout.
    xp_t, ho, wo = _im2col_t(x * mask, kh, kw, stride, padding)     # [K, M]
    k_dim, m_rows = xp_t.shape

    # Per-output-pixel sum of the mask window: channel-reduce first (tiny), then
    # the 9-tap window sum. This replaces the full [M, K] mask-patch operand.
    mask_c = jnp.sum(mask, axis=1, keepdims=True)                   # [N, 1, H, W]
    msum_taps, _, _ = _im2col_t(mask_c, kh, kw, stride, padding)    # [kh*kw, M]
    msum_row = jnp.sum(msum_taps, axis=0, keepdims=True)            # [1, M]

    w2d = weight.reshape(c_out, c_in * kh * kw).astype(jnp.float32)  # [C_out, K]

    # Tile the pixel axis M (lanes). Tiles are multiples of 128 for lane density;
    # M is zero-padded (padded pixels are holes -> out 0, mask 0, no BN impact).
    tm = min(tile_m, _round_up(m_rows, 128))
    tm = _round_up(tm, 128)
    m_pad = _round_up(m_rows, tm)
    n_tiles = m_pad // tm
    if m_pad != m_rows:
        xp_t = jnp.pad(xp_t, ((0, 0), (0, m_pad - m_rows)))
        msum_row = jnp.pad(msum_row, ((0, 0), (0, m_pad - m_rows)))

    # v7x has 64 MiB physical VMEM; these tiles are well under 32 MiB scoped.
    cparams = pltpu.CompilerParams(dimension_semantics=("parallel",),
                                   vmem_limit_bytes=32 * 1024 * 1024)

    # ---------------- Pass 1: partial conv + partial BN sums -----------------
    out_raw, nmask_row, part_sum, part_ssq = pl.pallas_call(
        _pconv_kernel,
        out_shape=(
            jax.ShapeDtypeStruct((c_out, m_pad), jnp.float32),
            jax.ShapeDtypeStruct((1, m_pad), jnp.float32),
            jax.ShapeDtypeStruct((n_tiles, c_out, 1), jnp.float32),
            jax.ShapeDtypeStruct((n_tiles, c_out, 1), jnp.float32),
        ),
        grid_spec=pltpu.PrefetchScalarGridSpec(
            num_scalar_prefetch=0,
            grid=(n_tiles,),
            in_specs=[
                pl.BlockSpec((k_dim, tm), lambda i: (0, i)),     # patches
                pl.BlockSpec((1, tm), lambda i: (0, i)),         # mask window sums
                pl.BlockSpec((c_out, k_dim), lambda i: (0, 0)),  # weight (resident)
            ],
            out_specs=[
                pl.BlockSpec((c_out, tm), lambda i: (0, i)),
                pl.BlockSpec((1, tm), lambda i: (0, i)),
                pl.BlockSpec((1, c_out, 1), lambda i: (i, 0, 0)),
                pl.BlockSpec((1, c_out, 1), lambda i: (i, 0, 0)),
            ],
        ),
        compiler_params=cparams,
        cost_estimate=pl.CostEstimate(
            flops=2 * m_pad * k_dim * c_out,
            transcendentals=m_pad,
            bytes_accessed=4 * (k_dim * m_pad + m_pad + c_out * k_dim
                                + c_out * m_pad + m_pad + 2 * n_tiles * c_out),
        ),
    )(xp_t, msum_row, w2d)

    # -------- Tiny XLA reduce: batch statistics -> folded BN scale/shift ------
    total = jnp.sum(part_sum, axis=0)                 # [C_out, 1]
    total_sq = jnp.sum(part_ssq, axis=0)              # [C_out, 1]
    m_f = jnp.float32(m_rows)
    mean = total / m_f
    var = jnp.maximum(total_sq / m_f - mean * mean, 0.0)   # biased, training mode
    scale = gamma.reshape(c_out, 1).astype(jnp.float32) * lax.rsqrt(var + BN_EPS)
    shift = beta.reshape(c_out, 1).astype(jnp.float32) - mean * scale

    # ---------------- Pass 2: apply BN + ReLU (tiled, parallel) ---------------
    y2d = pl.pallas_call(
        _bn_act_kernel,
        out_shape=jax.ShapeDtypeStruct((c_out, m_pad), jnp.float32),
        grid_spec=pltpu.PrefetchScalarGridSpec(
            num_scalar_prefetch=0,
            grid=(n_tiles,),
            in_specs=[
                pl.BlockSpec((c_out, tm), lambda i: (0, i)),
                pl.BlockSpec((c_out, 1), lambda i: (0, 0)),      # resident
                pl.BlockSpec((c_out, 1), lambda i: (0, 0)),      # resident
            ],
            out_specs=pl.BlockSpec((c_out, tm), lambda i: (0, i)),
        ),
        compiler_params=cparams,
        cost_estimate=pl.CostEstimate(
            flops=3 * c_out * m_pad,
            transcendentals=0,
            bytes_accessed=4 * (2 * c_out * m_pad + 2 * c_out),
        ),
    )(out_raw, scale, shift)

    # ---------------- Back to NCHW ----------------
    out = y2d[:, :m_rows].reshape(c_out, n, ho, wo).transpose(1, 0, 2, 3)
    nm = nmask_row[0, :m_rows].reshape(n, ho, wo)
    mask_out = jnp.broadcast_to(nm[:, None, :, :], (n, c_out, ho, wo))
    return out, mask_out


# ----------------------------------------------------------------------------
# Pure-JAX reference (mirrors PyTorch PartialConv + BN(train) + ReLU)
# ----------------------------------------------------------------------------
def pcbactiv_reference(x, mask, weight, gamma, beta, stride=1, padding=1):
    dn = lax.conv_dimension_numbers(x.shape, weight.shape, ("NCHW", "OIHW", "NCHW"))
    conv = lax.conv_general_dilated(x * mask, weight, (stride, stride),
                                    [(padding, padding)] * 2, dimension_numbers=dn)
    ones_w = jnp.ones_like(weight)
    mask_sum = lax.conv_general_dilated(mask, ones_w, (stride, stride),
                                        [(padding, padding)] * 2, dimension_numbers=dn)
    holes = mask_sum == 0.0
    denom = jnp.where(holes, 1.0, mask_sum)
    out = jnp.where(holes, 0.0, conv / denom)
    new_mask = jnp.where(holes, 0.0, 1.0)
    mean = jnp.mean(out, axis=(0, 2, 3), keepdims=True)
    var = jnp.mean((out - mean) ** 2, axis=(0, 2, 3), keepdims=True)
    y = (out - mean) * lax.rsqrt(var + BN_EPS)
    y = y * gamma.reshape(1, -1, 1, 1) + beta.reshape(1, -1, 1, 1)
    return jnp.maximum(y, 0.0), new_mask


if __name__ == "__main__":
    key = jax.random.PRNGKey(0)
    k_x, k_m, k_w = jax.random.split(key, 3)

    N, C_IN, H, W = 2, 4, 16, 16
    C_OUT, KH, KW = 8, 3, 3

    x = jax.random.normal(k_x, (N, C_IN, H, W), dtype=jnp.float32)
    mask = (jax.random.uniform(k_m, (N, C_IN, H, W)) > 0.4).astype(jnp.float32)
    weight = jax.random.normal(k_w, (C_OUT, C_IN, KH, KW), dtype=jnp.float32) * 0.1
    gamma = 1.0 + 0.1 * jnp.arange(C_OUT, dtype=jnp.float32)
    beta = 0.05 * jnp.arange(C_OUT, dtype=jnp.float32)

    # Small tile to exercise the multi-tile (grid=4) pipelined path.
    out, mask_out = pcbactiv_forward(x, mask, weight, gamma, beta, tile_m=128)
    out, mask_out = jax.block_until_ready((out, mask_out))

    ref_out, ref_mask = pcbactiv_reference(x, mask, weight, gamma, beta)
    np.testing.assert_allclose(np.asarray(out), np.asarray(ref_out),
                               rtol=2e-3, atol=2e-3)
    np.testing.assert_allclose(np.asarray(mask_out), np.asarray(ref_mask),
                               rtol=1e-5, atol=1e-5)

    # Odd spatial size exercises the M zero-padding path (M = 169 -> 256).
    x2 = jax.random.normal(k_x, (1, C_IN, 13, 13), dtype=jnp.float32)
    m2 = (jax.random.uniform(k_m, (1, C_IN, 13, 13)) > 0.5).astype(jnp.float32)
    out2, mo2 = pcbactiv_forward(x2, m2, weight, gamma, beta)
    out2, mo2 = jax.block_until_ready((out2, mo2))
    r2, rm2 = pcbactiv_reference(x2, m2, weight, gamma, beta)
    np.testing.assert_allclose(np.asarray(out2), np.asarray(r2),
                               rtol=2e-3, atol=2e-3)
    np.testing.assert_allclose(np.asarray(mo2), np.asarray(rm2),
                               rtol=1e-5, atol=1e-5)

    print("KERNEL_OK")
</pallas_src>

<mosaic_0001>
module attributes {stable_mosaic.version = 11 : i64} {
  func.func @_pconv_kernel(%arg0: i32, %arg1: memref<36x128xf32, #tpu.memory_space<vmem>>, %arg2: memref<1x128xf32, #tpu.memory_space<vmem>>, %arg3: memref<8x36xf32, #tpu.memory_space<vmem>>, %arg4: memref<8x128xf32, #tpu.memory_space<vmem>>, %arg5: memref<1x128xf32, #tpu.memory_space<vmem>>, %arg6: memref<1x8x1xf32, #tpu.memory_space<vmem>>, %arg7: memref<1x8x1xf32, #tpu.memory_space<vmem>>) attributes {dimension_semantics = [#tpu.dimension_semantics<parallel>], iteration_bounds = array<i64: 4>, scalar_prefetch = 0 : i64, scratch_operands = 0 : i64, tpu.core_type = #tpu.core_type<tc>, window_params = [{transform_indices = @transform_0, window_bounds = array<i64: 36, 128>}, {transform_indices = @transform_1, window_bounds = array<i64: 1, 128>}, {pipeline_mode = #tpu.pipeline_mode<synchronous>, transform_indices = @transform_2, window_bounds = array<i64: 8, 36>}, {transform_indices = @transform_3, window_bounds = array<i64: 8, 128>}, {transform_indices = @transform_4, window_bounds = array<i64: 1, 128>}, {transform_indices = @transform_5, window_bounds = array<i64: 1, 8, 1>}, {transform_indices = @transform_6, window_bounds = array<i64: 1, 8, 1>}]} {
    %c0 = arith.constant 0 : index
    %c0_0 = arith.constant 0 : index
    %0 = vector.load %arg1[%c0, %c0_0] : memref<36x128xf32, #tpu.memory_space<vmem>>, vector<36x128xf32>
    %c0_1 = arith.constant 0 : index
    %c0_2 = arith.constant 0 : index
    %1 = vector.load %arg3[%c0_1, %c0_2] : memref<8x36xf32, #tpu.memory_space<vmem>>, vector<8x36xf32>
    %c0_3 = arith.constant 0 : index
    %c0_4 = arith.constant 0 : index
    %2 = vector.load %arg2[%c0_3, %c0_4] : memref<1x128xf32, #tpu.memory_space<vmem>>, vector<1x128xf32>
    %cst = arith.constant dense<0.000000e+00> : vector<8x128xf32>
    %3 = tpu.matmul %1, %0, %cst {dimension_numbers = #tpu.dot_dimension_numbers<[1], [0], [0], [1], [0, 0, 1, 1], [], []>} : vector<8x36xf32>, vector<36x128xf32>, vector<8x128xf32> -> vector<8x128xf32>
    %cst_5 = arith.constant 0.000000e+00 : f32
    %4 = vector.broadcast %cst_5 : f32 to vector<1x128xf32>
    %5 = arith.cmpf oeq, %2, %4 : vector<1x128xf32>
    %cst_6 = arith.constant 1.000000e+00 : f32
    %6 = vector.broadcast %cst_6 : f32 to vector<1x128xf32>
    %7 = arith.select %5, %6, %2 : vector<1x128xi1>, vector<1x128xf32>
    %8 = tpu.reciprocal %7 {approx = true} : vector<1x128xf32> -> vector<1x128xf32>
    %9 = vector.broadcast %8 : vector<1x128xf32> to vector<8x128xf32>
    %10 = arith.mulf %3, %9 : vector<8x128xf32>
    %cst_7 = arith.constant 0.000000e+00 : f32
    %11 = vector.shape_cast %5 : vector<1x128xi1> to vector<1x128xi1>
    %12 = vector.broadcast %11 : vector<1x128xi1> to vector<8x128xi1>
    %13 = vector.broadcast %cst_7 : f32 to vector<8x128xf32>
    %14 = arith.select %12, %13, %10 : vector<8x128xi1>, vector<8x128xf32>
    %c0_8 = arith.constant 0 : index
    %c0_9 = arith.constant 0 : index
    %15 = vector.load %arg4[%c0_8, %c0_9] : memref<8x128xf32, #tpu.memory_space<vmem>>, vector<8x128xf32>
    tpu.vector_store %arg4[%c0_8, %c0_9], %14 {strides = array<i32>} : memref<8x128xf32, #tpu.memory_space<vmem>>, vector<8x128xf32>,
    %cst_10 = arith.constant dense<true> : vector<1x128xi1>
    %16 = arith.xori %5, %cst_10 : vector<1x128xi1>
    %17 = arith.extui %16 : vector<1x128xi1> to vector<1x128xi32>
    %18 = arith.sitofp %17 : vector<1x128xi32> to vector<1x128xf32>
    %c0_11 = arith.constant 0 : index
    %c0_12 = arith.constant 0 : index
    %19 = vector.load %arg5[%c0_11, %c0_12] : memref<1x128xf32, #tpu.memory_space<vmem>>, vector<1x128xf32>
    tpu.vector_store %arg5[%c0_11, %c0_12], %18 {strides = array<i32>} : memref<1x128xf32, #tpu.memory_space<vmem>>, vector<1x128xf32>,
    %cst_13 = arith.constant dense<0.000000e+00> : vector<8xf32>
    %20 = vector.multi_reduction <add>, %14, %cst_13 [1] : vector<8x128xf32> to vector<8xf32>
    %21 = vector.shape_cast %20 : vector<8xf32> to vector<8x1xf32>
    %22 = vector.shape_cast %21 : vector<8x1xf32> to vector<1x8x1xf32>
    %c0_14 = arith.constant 0 : index
    %c0_15 = arith.constant 0 : index
    %c0_16 = arith.constant 0 : index
    %23 = vector.load %arg6[%c0_14, %c0_15, %c0_16] : memref<1x8x1xf32, #tpu.memory_space<vmem>>, vector<1x8x1xf32>
    tpu.vector_store %arg6[%c0_14, %c0_15, %c0_16], %22 {strides = array<i32>} : memref<1x8x1xf32, #tpu.memory_space<vmem>>, vector<1x8x1xf32>,
    %24 = arith.mulf %14, %14 : vector<8x128xf32>
    %cst_17 = arith.constant dense<0.000000e+00> : vector<8xf32>
    %25 = vector.multi_reduction <add>, %24, %cst_17 [1] : vector<8x128xf32> to vector<8xf32>
    %26 = vector.shape_cast %25 : vector<8xf32> to vector<8x1xf32>
    %27 = vector.shape_cast %26 : vector<8x1xf32> to vector<1x8x1xf32>
    %c0_18 = arith.constant 0 : index
    %c0_19 = arith.constant 0 : index
    %c0_20 = arith.constant 0 : index
    %28 = vector.load %arg7[%c0_18, %c0_19, %c0_20] : memref<1x8x1xf32, #tpu.memory_space<vmem>>, vector<1x8x1xf32>
    tpu.vector_store %arg7[%c0_18, %c0_19, %c0_20], %27 {strides = array<i32>} : memref<1x8x1xf32, #tpu.memory_space<vmem>>, vector<1x8x1xf32>,
    return
  }
  func.func @transform_0(%arg0: i32) -> (i32, i32) {
    %c0_i32 = arith.constant 0 : i32
    %c0_i32_0 = arith.constant 0 : i32
    return %c0_i32, %arg0 : i32, i32
  }
  func.func @transform_1(%arg0: i32) -> (i32, i32) {
    %c0_i32 = arith.constant 0 : i32
    %c0_i32_0 = arith.constant 0 : i32
    return %c0_i32, %arg0 : i32, i32
  }
  func.func @transform_2(%arg0: i32) -> (i32, i32) {
    %c0_i32 = arith.constant 0 : i32
    %c0_i32_0 = arith.constant 0 : i32
    %c0_i32_1 = arith.constant 0 : i32
    return %c0_i32, %c0_i32_0 : i32, i32
  }
  func.func @transform_3(%arg0: i32) -> (i32, i32) {
    %c0_i32 = arith.constant 0 : i32
    %c0_i32_0 = arith.constant 0 : i32
    return %c0_i32, %arg0 : i32, i32
  }
  func.func @transform_4(%arg0: i32) -> (i32, i32) {
    %c0_i32 = arith.constant 0 : i32
    %c0_i32_0 = arith.constant 0 : i32
    return %c0_i32, %arg0 : i32, i32
  }
  func.func @transform_5(%arg0: i32) -> (i32, i32, i32) {
    %c0_i32 = arith.constant 0 : i32
    %c0_i32_0 = arith.constant 0 : i32
    %c0_i32_1 = arith.constant 0 : i32
    return %arg0, %c0_i32, %c0_i32_0 : i32, i32, i32
  }
  func.func @transform_6(%arg0: i32) -> (i32, i32, i32) {
    %c0_i32 = arith.constant 0 : i32
    %c0_i32_0 = arith.constant 0 : i32
    %c0_i32_1 = arith.constant 0 : i32
    return %arg0, %c0_i32, %c0_i32_0 : i32, i32, i32
  }
}

module attributes {stable_mosaic.version = 11 : i64} {
  func.func @_bn_act_kernel(%arg0: i32, %arg1: memref<8x128xf32, #tpu.memory_space<vmem>>, %arg2: memref<8x1xf32, #tpu.memory_space<vmem>>, %arg3: memref<8x1xf32, #tpu.memory_space<vmem>>, %arg4: memref<8x128xf32, #tpu.memory_space<vmem>>) attributes {dimension_semantics = [#tpu.dimension_semantics<parallel>], iteration_bounds = array<i64: 4>, scalar_prefetch = 0 : i64, scratch_operands = 0 : i64, tpu.core_type = #tpu.core_type<tc>, window_params = [{transform_indices = @transform_0, window_bounds = array<i64: 8, 128>}, {pipeline_mode = #tpu.pipeline_mode<synchronous>, transform_indices = @transform_1, window_bounds = array<i64: 8, 1>}, {pipeline_mode = #tpu.pipeline_mode<synchronous>, transform_indices = @transform_2, window_bounds = array<i64: 8, 1>}, {transform_indices = @transform_3, window_bounds = array<i64: 8, 128>}]} {
    %c0 = arith.constant 0 : index
    %c0_0 = arith.constant 0 : index
    %0 = vector.load %arg1[%c0, %c0_0] : memref<8x128xf32, #tpu.memory_space<vmem>>, vector<8x128xf32>
    %c0_1 = arith.constant 0 : index
    %c0_2 = arith.constant 0 : index
    %1 = vector.load %arg2[%c0_1, %c0_2] : memref<8x1xf32, #tpu.memory_space<vmem>>, vector<8x1xf32>
    %2 = vector.broadcast %1 : vector<8x1xf32> to vector<8x128xf32>
    %3 = arith.mulf %0, %2 : vector<8x128xf32>
    %c0_3 = arith.constant 0 : index
    %c0_4 = arith.constant 0 : index
    %4 = vector.load %arg3[%c0_3, %c0_4] : memref<8x1xf32, #tpu.memory_space<vmem>>, vector<8x1xf32>
    %5 = vector.broadcast %4 : vector<8x1xf32> to vector<8x128xf32>
    %6 = arith.addf %3, %5 : vector<8x128xf32>
    %cst = arith.constant 0.000000e+00 : f32
    %7 = vector.broadcast %cst : f32 to vector<8x128xf32>
    %8 = arith.maximumf %6, %7 : vector<8x128xf32>
    %c0_5 = arith.constant 0 : index
    %c0_6 = arith.constant 0 : index
    %9 = vector.load %arg4[%c0_5, %c0_6] : memref<8x128xf32, #tpu.memory_space<vmem>>, vector<8x128xf32>
    tpu.vector_store %arg4[%c0_5, %c0_6], %8 {strides = array<i32>} : memref<8x128xf32, #tpu.memory_space<vmem>>, vector<8x128xf32>,
    return
  }
  func.func @transform_0(%arg0: i32) -> (i32, i32) {
    %c0_i32 = arith.constant 0 : i32
    %c0_i32_0 = arith.constant 0 : i32
    return %c0_i32, %arg0 : i32, i32
  }
  func.func @transform_1(%arg0: i32) -> (i32, i32) {
    %c0_i32 = arith.constant 0 : i32
    %c0_i32_0 = arith.constant 0 : i32
    %c0_i32_1 = arith.constant 0 : i32
    return %c0_i32, %c0_i32_0 : i32, i32
  }
  func.func @transform_2(%arg0: i32) -> (i32, i32) {
    %c0_i32 = arith.constant 0 : i32
    %c0_i32_0 = arith.constant 0 : i32
    %c0_i32_1 = arith.constant 0 : i32
    return %c0_i32, %c0_i32_0 : i32, i32
  }
  func.func @transform_3(%arg0: i32) -> (i32, i32) {
    %c0_i32 = arith.constant 0 : i32
    %c0_i32_0 = arith.constant 0 : i32
    return %c0_i32, %arg0 : i32, i32
  }
}

</mosaic_0001>

<bundles_post_ra>
// kernel: pcbactiv_forward.2
= control target key start
LH: loop header
LB: loop body
LE: loop exit
PB: predicated region body
PF: predicated region fallthrough
CT: control target
= control target key end

     0   :  { %s665_s21 = smov 0   ;;  %s667_s22 = smov 0   ;;  %s734_s0 = inlined_call_operand.vmem [shape: f32[36,512], index: 0, kind: input, shape index: {}]   ;;  %s735_s1 = inlined_call_operand.vmem [shape: f32[1,512], index: 1, kind: input, shape index: {}]   ;;  %s736_s2 = inlined_call_operand.vmem [shape: f32[8,36], index: 2, kind: input, shape index: {}]   ;;  %s737_s3 = inlined_call_operand.vmem [shape: f32[8,512], index: 3, kind: output, shape index: {0}]   ;;  %s738_s4 = inlined_call_operand.vmem [shape: f32[1,512], index: 4, kind: output, shape index: {1}]   ;;  %s739_s5 = inlined_call_operand.vmem [shape: f32[4,8,1], index: 5, kind: output, shape index: {2}]   ;;  %s740_s6 = inlined_call_operand.vmem [shape: f32[4,8,1], index: 6, kind: output, shape index: {3}]  }
   0x1   :  { %s669_s23 = smov 0  }
   0x2 LB: > { %s558_s24 = sadd.s32 4294967295, %s625_s23   ;;  %s682_s25 = sadd.s32 1, %s625_s23   ;;  %s625_s23 = sphi %s669_s23, %s743_s23   ;;  %s621_s22 = sphi %s667_s22, %s742_s22   ;;  %s617_s21 = sphi %s665_s21, %s741_s21  }
   0x3   : > { %s21_s26 = ssub.s32 %s625_s23, %s682_s25  ;;  %s24_s27 = sadd.s32 1, %s621_s22 }
   0x4   : > { %p22_p0 = scmp.eq.s32.totalorder %s21_s26, 0  ;;  %p31_p1 = scmp.ne.s32.totalorder %s621_s22, %s617_s21 }
   0x5   : > { %p32_p2 = scmp.eq.s32.totalorder %s625_s23, 0  ;;  %p561_p4 = scmp.ge.s32.totalorder %s625_s23, 4 }
   0x6   : > { %s691_s28 = scalar_select %p22_p0, %s621_s22, %s24_s27  }
   0x7   : > { %p33_p3 = por %p32_p2, %p31_p1  ;;  %211 = sbr.rel (%p561_p4) target bundleno = 21 (0x15), region = 20 }
   0xc   : > { %214 = sbr.rel (!%p33_p3) target bundleno = 21 (0x15), region = 24  ;;  %s216_s29 = sand.u32 (%p33_p3), 1, %s621_s22  }
   0xd   : > { %s562_s30 = sshll.u32 (%p33_p3), %s625_s23, 3  ;;  %s572_s7 = smul.u32 (%p33_p3), 40, %s216_s29 }
   0xe   : > { %s220_s10 = scalar_lea.vmem (%p33_p3), %s734_s0, %s562_s30 }
   0xf   : > { %v257_v0 = vld [vmem:[%s220_s10] sm:$0xff] (%p33_p3)  ;;  %s218_s11 = scalar_lea.vmem (%p33_p3), [#allocation2], %s572_s7 }
  0x10   : > { %v259_v1 = vld [vmem:[%s220_s10 + $0x20] sm:$0xff] (%p33_p3)  ;;  %258 = vst [vmem:[%s218_s11] sm:$0xff] (%p33_p3), %v257_v0 }
  0x11   : > { %v261_v2 = vld [vmem:[%s220_s10 + $0x40] sm:$0xff]  ;;  %260 = vst [vmem:[%s218_s11 + $0x8] sm:$0xff] %v259_v1 }
  0x12   : > { %v263_v3 = vld [vmem:[%s220_s10 + $0x60] sm:$0xff]  ;;  %262 = vst [vmem:[%s218_s11 + $0x10] sm:$0xff] %v261_v2 }
  0x13   : > { %v265_v4 = vld [vmem:[%s220_s10 + $0x80] sm:$0xff]  ;;  %264 = vst [vmem:[%s218_s11 + $0x18] sm:$0xff] %v263_v3 }
  0x14   : > { %266 = vst [vmem:[%s218_s11 + $0x20] sm:$0xff] %v265_v4 }
  0x15 PF: > { %p563_p5 = scmp.ge.s32.totalorder %s625_s23, 1  ;;  %p277_p6 = scmp.lt.s32.totalorder %s625_s23, 5 }
  0x17   : > { %p278_p7 = pnand %p563_p5, %p277_p6 }
  0x18   : > { %s284_s12 = sand.u32 (!%p278_p7), 1, %s617_s21   ;;  %p326_p8 = scmp.lt.s32.totalorder (!%p278_p7), %s558_s24, 3 }
  0x19   : > { %281 = sbr.rel (%p278_p7) target bundleno = 294 (0x126), region = 66 }
  0x1a   : > { %s573_s13 = smul.u32 (!%p278_p7), 40, %s284_s12 }
  0x1c   : > { %s286_s14 = scalar_lea.vmem (!%p278_p7), [#allocation2], %s573_s13 }
  0x1e   : > { %vm355_vm0 = vcmask 1043456   ;;  %v348_v5 = vld [vmem:[%s286_s14 + $0x20] sm:$0xf]  ;;  %v347_v6 = vld [vmem:[%s286_s14 + $0x18] sm:$0xff]  ;;  %v346_v7 = vld [vmem:[%s286_s14 + $0x10] sm:$0xff]  ;;  %vm351_vm1 = vcmask 293888  }
  0x1f   : > { %567 = vmatpush.msk.msra.mxu0 %vm355_vm0, %v348_v5  ;;  %v345_v8 = vld [vmem:[%s286_s14 + $0x8] sm:$0xff]  ;;  %v344_v9 = vld [vmem:[%s286_s14] sm:$0xff]  ;;  %s745_s24 = smov (!%p326_p8, %s558_s24), 3  ;;  %vm627_vm3 = vmmov 1   ;;  %v628_v12 = vmov 0.0   ;;  %v629_v15 = vmov 0  }
  0x20   : > { %v349_v10 = vld [vmem:[%s736_s2] sm:$0xff]  ;;  %s328_s19 = scalar_lea.vmem %s735_s1, %s745_s24  ;;  %s335_s26 = scalar_lea.vmem %s738_s4, %s745_s24  ;;  %vm397_vm6 = vcmask 7168  }
  0x21   : > { %371 = vmatpush.msra.mxu0 %v347_v6  ;;  %v350_v11 = vld [vmem:[%s328_s19] sm:$0x1]  ;;  %s564_s23 = sshll.u32 %s745_s24, 3 }
  0x22   : > { %vm379_vm2 = vcmp.eq.f32.partialorder %v350_v11, 0.0  ;;  %s332_s30 = scalar_lea.vmem %s737_s3, %s564_s23  ;;  %s339_s9 = scalar_lea.vmem %s739_s5, %s564_s23 }
  0x23   : > { %372 = vmatpush.msra.mxu0 %v346_v7  ;;  %vm391_vm4 = vmxor %vm379_vm2, %vm627_vm3  ;;  %v380_v14 = vsel %vm379_vm2, 1.0, %v350_v11  ;;  %v386_v16 = vsel %vm379_vm2, 1, %v629_v15  ;;  %s343_s11 = scalar_lea.vmem %s740_s6, %s564_s23 }
  0x24   : > { %v569_v13 = vsel %vm391_vm4, 1.0, %v628_v12  ;;  %601 = vrcp.f32 %v380_v14  ;;  %v387_v18 = vperm.slane %v386_v16, 0 }
  0x25   : > { %373 = vmatpush.msra.mxu0 %v345_v8  ;;  %394 = vst [vmem:[%s335_s26] sm:$0x1] %v569_v13 }
  0x26   : > { %vm388_vm5 = vcmp.eq.s32.totalorder %v387_v18, 1 }
  0x27   : > { %374 = vmatpush.msra.mxu0 %v344_v9 }
  0x28   : > { %568 = vmatmul.msk.f32.vlgmr.msra.gmra.mxu0 %vm351_vm1, %v349_v10 }
  0x2a   : > { %v602_v17 = vpop.eup %601 }
  0x2b   : > { %v383_v19 = vperm.slane %v602_v17, 0 }
  0xa5   : > { %v376_v20 = vpop.f32.mrf.mxu0 }
  0xa6   : > { %v385_v21 = vmul.f32 %v383_v19, %v376_v20 }
  0xa8   : > { %v389_v22 = vsel %vm388_vm5, 0.0, %v385_v21 }
  0xa9   : > { %395 = vadd.xlane.f32.xlu0 %v389_v22  ;;  %390 = vst [vmem:[%s332_s30] sm:$0xff] %v389_v22  ;;  %v399_v23 = vmul.f32 %v389_v22, %v389_v22 }
  0xb1   : > { %400 = vadd.xlane.f32.xlu0 %v399_v23 }
 0x11c   : > { %v396_v24 = vpop.xlane.xlu0 %395 }
 0x11d   : > { %398 = vst.msk [vmem:[%s339_s9] sm:$0xff] %vm397_vm6, %v396_v24 }
 0x124   : > { %v401_v25 = vpop.xlane.xlu0 %400 }
 0x125   : > { %402 = vst.msk [vmem:[%s343_s11] sm:$0xff] %vm397_vm6, %v401_v25 }
 0x126 PF: > { %p14_p9 = scmp.ge.s32.totalorder %s682_s25, 6   ;;  %s741_s21 = smov %s621_s22 }
 0x127   : > { %s742_s22 = smov %s691_s28  ;;  %s743_s23 = smov %s682_s25 }
 0x128   :  { %16 = sbr.rel (!%p14_p9) target bundleno = 2 (0x2), region = 144 }

// kernel: pcbactiv_forward.3
= control target key start
LH: loop header
LB: loop body
LE: loop exit
PB: predicated region body
PF: predicated region fallthrough
CT: control target
= control target key end

     0   :  { %s284_s12 = smov 0   ;;  %s301_s0 = inlined_call_operand.vmem [shape: f32[8,512], index: 0, kind: input, shape index: {}]   ;;  %s302_s1 = inlined_call_operand.vmem [shape: f32[8,1], index: 1, kind: input, shape index: {}]   ;;  %s303_s2 = inlined_call_operand.vmem [shape: f32[8,1], index: 2, kind: input, shape index: {}]   ;;  %s304_s3 = inlined_call_operand.vmem [shape: f32[8,512], index: 3, kind: output, shape index: {}]  }
   0x1 LB: > { %s236_s13 = sadd.s32 4294967295, %s261_s12   ;;  %p240_p0 = scmp.ge.s32.totalorder %s261_s12, 1  ;;  %s261_s12 = sphi %s284_s12, %s13_s12  }
   0x2   : > { %p136_p1 = scmp.lt.s32.totalorder %s261_s12, 5 }
   0x4   : > { %p137_p2 = pnand %p240_p0, %p136_p1 }
   0x5   : > { %p158_p3 = scmp.lt.s32.totalorder (!%p137_p2), %s236_s13, 3 }
   0x6   : > { %140 = sbr.rel (%p137_p2) target bundleno = 141 (0x8d), region = 32 }
   0xb   : > { %v167_v0 = vld [vmem:[%s302_s1] sm:$0xff]  ;;  %v263_v1 = vmov 0   ;;  %s306_s13 = smov (!%p158_p3, %s236_s13), 3 }
   0xc   : > { %254 = vset.pattern.permute.xlu0 %v263_v1  ;;  %v174_v2 = vld [vmem:[%s303_s2] sm:$0xff]  ;;  %s241_s18 = sshll.u32 %s306_s13, 3 }
   0xd   : > { %170 = vperm.xlu0 %254, %v167_v0   ;;  %s161_s21 = scalar_lea.vmem %s301_s0, %s241_s18  ;;  %s165_s24 = scalar_lea.vmem %s304_s3, %s241_s18 }
   0xe   : > { %v166_v4 = vld [vmem:[%s161_s21] sm:$0xff] }
  0x15   : > { %177 = vperm.xlu0 %254, %v174_v2  }
  0x7f   : > { %v171_v3 = vpop.permute.xlu0 %170 }
  0x80   : > { %v173_v5 = vmul.f32 %v171_v3, %v166_v4 }
  0x87   : > { %v178_v6 = vpop.permute.xlu0 %177 }
  0x88   : > { %v180_v7 = vadd.f32 %v178_v6, %v173_v5 }
  0x8a   : > { %v181_v8 = vmax.f32 %v180_v7, 0.0 }
  0x8c   : > { %182 = vst [vmem:[%s165_s24] sm:$0xff] %v181_v8 }
  0x8d PF: > { %s13_s12 = sadd.s32 1, %s261_s12  }
  0x8e   : > { %p10_p4 = scmp.ge.s32.totalorder %s13_s12, 6  }
  0x90   :  { %12 = sbr.rel (!%p10_p4) target bundleno = 1 (0x1), region = 62 }

</bundles_post_ra>
